<compile_context>
chip_gen: v5e
topology: v5e:2x2
jax: 0.10.0
libtpu: 0.0.40
codegen_flags: <defaults>
</compile_context>

<pallas_src>
import jax
import jax.numpy as jnp
from jax.experimental import pallas as pl
from jax.experimental.pallas import tpu as pltpu

_LANE = 128


def _round_up(x, m):
    return ((x + m - 1) // m) * m


def _tpu_vmem_capacity_bytes():
    try:
        return int(pltpu.get_tpu_info().vmem_capacity_bytes)
    except Exception:
        return 128 * 1024 * 1024  # v5e/v6e physical VMEM


def _select_tiles(B, C, HW, itemsize, budget):
    """Pick (tile_b, tile_hw).

    Keeps the padded, double-buffered working set (input block + both output
    blocks) under `budget`.  The output blocks put tile_b on the sublane axis,
    so tile_b must be a multiple of 8 or the full batch extent.
    """
    pack = max(1, 32 // itemsize)            # sublane packing for this dtype
    c_pad = _round_up(max(C, 1), pack)

    def per_lane_bytes(tb):
        # bytes per 128-padded spatial lane: 2x-buffered input block +
        # 2 outputs x 2 buffers, sublane padding included.
        return itemsize * (2 * tb * c_pad + 4 * _round_up(tb, pack))

    tb_min = B if B <= 8 else 8              # smallest legal batch tile

    # 1) Spatial tile: as many lanes as the budget allows at tb_min.
    max_tpad = budget // per_lane_bytes(tb_min)
    if max_tpad >= _round_up(HW, _LANE):
        tile_hw = HW                         # full spatial extent (always legal)
    else:
        tile_hw = max(_LANE, (max_tpad // _LANE) * _LANE)
    # NOTE: if HW < 128 (e.g. 7x7 late feature maps) lane occupancy is HW/128;
    # only an upstream layout change / producer fusion can recover that.

    # 2) Pack batches up to the budget (no small-block early exit).
    t_pad = _round_up(min(tile_hw, HW), _LANE)
    slope = itemsize * (2 * c_pad + 4)       # ~bytes per batch per padded lane
    tb = max(tb_min, budget // max(1, t_pad * slope))
    if tb >= B:
        tb = B
    else:
        tb = max(8, (tb // 8) * 8)           # keep output sublane dim legal

    # 3) Make sure the fully-parallel grid has >= 2 steps when splittable so
    #    both v7x TensorCores get work.
    steps = (-(-B // tb)) * (-(-HW // tile_hw))
    if steps < 2:
        if B > 8:
            tb = max(8, _round_up(-(-B // 2), 8))
        elif HW > _LANE:
            half = _round_up(-(-HW // 2), _LANE)
            if half < HW:
                tile_hw = half
        # else: the whole problem is a single tiny tile; nothing to split.

    return int(tb), int(tile_hw)


def _make_kernel(chan_group):
    def channel_pool_kernel(x_ref, max_ref, mean_ref):
        # x_ref: (TB, C, T) VMEM block; max_ref / mean_ref: (TB, T).
        c = x_ref.shape[1]
        mx = None
        sm = None
        # Single pass: each sublane-group is loaded into vregs once and feeds
        # both the running max (exact, input dtype) and the running f32 sum.
        for start in range(0, c, chan_group):
            stop = min(c, start + chan_group)
            xc = x_ref[:, start:stop, :]
            gmx = jnp.max(xc, axis=1)
            gsm = jnp.sum(xc, axis=1, dtype=jnp.float32)
            mx = gmx if mx is None else jnp.maximum(mx, gmx)
            sm = gsm if sm is None else sm + gsm
        max_ref[...] = mx.astype(max_ref.dtype)
        mean_ref[...] = (sm * (1.0 / c)).astype(mean_ref.dtype)

    return channel_pool_kernel


def channel_pool(x):
    """x: (B, C, H, W) -> (B, 2, H, W): [max over C, mean over C]."""
    B, C, H, W = x.shape
    HW = H * W
    itemsize = jnp.dtype(x.dtype).itemsize

    x2 = x.reshape(B, C, HW)                 # lane-dense spatial axis

    vmem_cap = _tpu_vmem_capacity_bytes()
    vmem_limit = min(96 * 1024 * 1024, (vmem_cap * 3) // 4)   # 96 MiB v5e/v6e, 48 MiB v7x
    budget = max(8 * 1024 * 1024, min(24 * 1024 * 1024, vmem_cap // 4))

    tile_b, tile_hw = _select_tiles(B, C, HW, itemsize, budget)
    grid = (pl.cdiv(B, tile_b), pl.cdiv(HW, tile_hw))

    # Channel group for the single-pass reduction: the dtype's sublane packing,
    # widened so the unrolled loop stays short for very deep inputs.
    pack = max(1, 32 // itemsize)
    chan_group = pack
    if -(-C // chan_group) > 32:
        chan_group = _round_up(-(-C // 32), pack)

    plane = jax.ShapeDtypeStruct((B, HW), x.dtype)
    mx2, mean2 = pl.pallas_call(
        _make_kernel(chan_group),
        out_shape=(plane, plane),
        grid_spec=pltpu.PrefetchScalarGridSpec(
            num_scalar_prefetch=0,
            grid=grid,
            in_specs=[pl.BlockSpec((tile_b, C, tile_hw), lambda b, t: (b, 0, t))],
            out_specs=[
                pl.BlockSpec((tile_b, tile_hw), lambda b, t: (b, t)),
                pl.BlockSpec((tile_b, tile_hw), lambda b, t: (b, t)),
            ],
        ),
        compiler_params=pltpu.CompilerParams(
            dimension_semantics=("parallel", "parallel"),
            vmem_limit_bytes=int(vmem_limit),
        ),
    )(x2)

    # Wrapper-side layout plumbing back to NCHW (kernel stores stay full-tile).
    return jnp.stack([mx2, mean2], axis=1).reshape(B, 2, H, W)


def _reference(x):
    return jnp.concatenate(
        [jnp.max(x, axis=1, keepdims=True), jnp.mean(x, axis=1, keepdims=True)],
        axis=1,
    )


if __name__ == "__main__":
    # Primary check: small NCHW input (C=4 also exercises the padded-sublane
    # max reduction, since f32 packs 8 sublanes).
    x = jax.random.normal(jax.random.PRNGKey(0), (2, 4, 16, 16), dtype=jnp.float32)
    out = jax.block_until_ready(channel_pool(x))
    assert out.shape == (2, 2, 16, 16), out.shape
    assert jnp.allclose(out, _reference(x), atol=1e-5, rtol=1e-5), "mismatch (2,4,16,16)"

    # Secondary check: C not a multiple of the sublane packing and a partial
    # trailing spatial tile (HW = 196 split into 128 + 68).
    x2 = jax.random.normal(jax.random.PRNGKey(0), (2, 6, 14, 14), dtype=jnp.float32)
    out2 = jax.block_until_ready(channel_pool(x2))
    assert out2.shape == (2, 2, 14, 14), out2.shape
    assert jnp.allclose(out2, _reference(x2), atol=1e-5, rtol=1e-5), "mismatch (2,6,14,14)"

    print("KERNEL_OK")
</pallas_src>

<mosaic_0001>
module attributes {stable_mosaic.version = 11 : i64} {
  func.func @channel_pool_kernel(%arg0: i32, %arg1: i32, %arg2: memref<2x4x128xf32, #tpu.memory_space<vmem>>, %arg3: memref<2x128xf32, #tpu.memory_space<vmem>>, %arg4: memref<2x128xf32, #tpu.memory_space<vmem>>) attributes {dimension_semantics = [#tpu.dimension_semantics<parallel>, #tpu.dimension_semantics<parallel>], iteration_bounds = array<i64: 1, 2>, scalar_prefetch = 0 : i64, scratch_operands = 0 : i64, tpu.core_type = #tpu.core_type<tc>, window_params = [{transform_indices = @transform_0, window_bounds = array<i64: 2, 4, 128>}, {transform_indices = @transform_1, window_bounds = array<i64: 2, 128>}, {transform_indices = @transform_2, window_bounds = array<i64: 2, 128>}]} {
    %c0 = arith.constant 0 : index
    %c0_0 = arith.constant 0 : index
    %c0_1 = arith.constant 0 : index
    %0 = vector.load %arg2[%c0, %c0_0, %c0_1] : memref<2x4x128xf32, #tpu.memory_space<vmem>>, vector<2x4x128xf32>
    %cst = arith.constant dense<0xFF800000> : vector<2x128xf32>
    %1 = vector.multi_reduction <maximumf>, %0, %cst [1] : vector<2x4x128xf32> to vector<2x128xf32>
    %cst_2 = arith.constant dense<0.000000e+00> : vector<2x128xf32>
    %2 = vector.multi_reduction <add>, %0, %cst_2 [1] : vector<2x4x128xf32> to vector<2x128xf32>
    %c0_3 = arith.constant 0 : index
    %c0_4 = arith.constant 0 : index
    %3 = vector.load %arg3[%c0_3, %c0_4] : memref<2x128xf32, #tpu.memory_space<vmem>>, vector<2x128xf32>
    tpu.vector_store %arg3[%c0_3, %c0_4], %1 {strides = array<i32>} : memref<2x128xf32, #tpu.memory_space<vmem>>, vector<2x128xf32>,
    %cst_5 = arith.constant 2.500000e-01 : f32
    %4 = vector.broadcast %cst_5 : f32 to vector<2x128xf32>
    %5 = arith.mulf %2, %4 : vector<2x128xf32>
    %c0_6 = arith.constant 0 : index
    %c0_7 = arith.constant 0 : index
    %6 = vector.load %arg4[%c0_6, %c0_7] : memref<2x128xf32, #tpu.memory_space<vmem>>, vector<2x128xf32>
    tpu.vector_store %arg4[%c0_6, %c0_7], %5 {strides = array<i32>} : memref<2x128xf32, #tpu.memory_space<vmem>>, vector<2x128xf32>,
    return
  }
  func.func @transform_0(%arg0: i32, %arg1: i32) -> (i32, i32, i32) {
    %c0_i32 = arith.constant 0 : i32
    %c0_i32_0 = arith.constant 0 : i32
    return %arg0, %c0_i32, %arg1 : i32, i32, i32
  }
  func.func @transform_1(%arg0: i32, %arg1: i32) -> (i32, i32) {
    %c0_i32 = arith.constant 0 : i32
    return %arg0, %arg1 : i32, i32
  }
  func.func @transform_2(%arg0: i32, %arg1: i32) -> (i32, i32) {
    %c0_i32 = arith.constant 0 : i32
    return %arg0, %arg1 : i32, i32
  }
}

</mosaic_0001>

<bundles_post_ra>
// kernel: tpu_custom_call.1
= control target key start
LH: loop header
LB: loop body
LE: loop exit
PB: predicated region body
PF: predicated region fallthrough
CT: control target
= control target key end

     0   :  { %8 = vsyncpa [#allocation3], 0  ;;  %s794_s0 = inlined_call_operand.hbm [shape: f32[2,4,256], index: 0, kind: input, shape index: {}]   ;;  %s795_s1 = inlined_call_operand.hbm [shape: f32[2,256], index: 1, kind: output, shape index: {0}]   ;;  %s796_s2 = inlined_call_operand.hbm [shape: f32[2,256], index: 2, kind: output, shape index: {1}]  }
   0x1   :  { %10 = vsyncpa [#allocation3 + $0x1], 0 }
   0x2   :  { %11 = vsyncpa [#allocation4], 0 }
   0x3   :  { %13 = vsyncpa [#allocation4 + $0x1], 0 }
   0x4   :  { %14 = vsyncpa [#allocation7], 0 }
   0x5   :  { %16 = vsyncpa [#allocation7 + $0x1], 0  ;;  %s646_s9 = smov 0   ;;  %s648_s10 = smov 0  }
   0x6   :  { %s650_s11 = smov 0   ;;  %s652_s12 = smov 0  }
   0x7   :  { %s654_s13 = smov 0   ;;  %s656_s14 = smov 0  }
   0x8 LB: > { %s396_s15 = sadd.s32 4294967295, %s626_s14   ;;  %s397_s16 = sadd.s32 4294967294, %s626_s14   ;;  %s626_s14 = sphi %s656_s14, %s22_s14   ;;  %s622_s13 = sphi %s654_s13, %s805_s13   ;;  %s618_s12 = sphi %s652_s12, %s804_s12   ;;  %s614_s11 = sphi %s650_s11, %s803_s11   ;;  %s610_s10 = sphi %s648_s10, %s802_s10   ;;  %s606_s9 = sphi %s646_s9, %s801_s9  }
   0x9   : > { %s31_s17 = sadd.s32 1, %s622_s13  ;;  %s43_s18 = sadd.s32 1, %s614_s11 }
   0xa   : > { %p32_p0 = scmp.ge.s32.totalorder %s31_s17, 2  ;;  %p50_p1 = scmp.ne.s32.totalorder %s614_s11, %s610_s10 }
   0xb   : > { %p51_p2 = scmp.eq.s32.totalorder %s626_s14, 0  ;;  %p56_p3 = scmp.ne.s32.totalorder %s610_s10, %s606_s9 }
   0xc   : > { %s807_s17 = smov (%p32_p0, %s31_s17), 0  ;;  %p57_p5 = scmp.eq.s32.totalorder %s396_s15, 0 }
   0xd   : > { %p687_p4 = por %p51_p2, %p50_p1  ;;  %s39_s20 = ssub.s32 %s622_s13, %s807_s17 }
   0xe   : > { %p82_p6 = scmp.eq.s32.totalorder %s396_s15, 1  ;;  %p41_p7 = scmp.eq.s32.totalorder %s39_s20, 0 }
   0xf   : > { %p693_p8 = por %p57_p5, %p56_p3  ;;  %p88_p10 = scmp.eq.s32.totalorder %s397_s16, 1 }
  0x10   : > { %p697_p9 = por %p82_p6, %p50_p1  ;;  %p399_p12 = scmp.ge.s32.totalorder %s626_s14, 2 }
  0x11   : > { %s702_s23 = scalar_select %p41_p7, %s614_s11, %s43_s18  }
  0x12   : > { %p704_p11 = por %p88_p10, %p56_p3  ;;  %p429_p13 = scmp.lt.s32.totalorder %s626_s14, 2 }
  0x13   : > { %s136_s25 = sand.u32 1, %s614_s11   ;;  %s401_s27 = sshll.u32 %s622_s13, 2 }
  0x14   : > { %s400_s26 = sshll.u32 %s136_s25, 3  ;;  %s147_s30 = scalar_lea.hbm %s794_s0, %s401_s27 }
  0x15   : > { %s140_s3 = scalar_lea.vmem [#allocation2], %s400_s26  ;;  %s148_s5 = sshll.u32 %s147_s30, 4  ;;  %s149_s5 = int_to_ptr.hbm [resolvable:$true] %s148_s5 }
  0x16   : > { %s150_s4 = sshll.u32 %s140_s3, 4  ;;  %p419_p0 = pnand %p429_p13, %p687_p4  ;;  %s151_s4 = int_to_ptr.vmem [resolvable:$true] %s150_s4 }
  0x17   : > { %s137_s6 = scalar_lea.sflag [#allocation3], %s136_s25  ;;  %s628_s7 = smov 128  }
  0x18   : > { %s629_s8 = smov 64   ;;  %s630_s15 = smov 4  }
  0x19   : > { %421 = dma.hbm_to_vmem [thread:$0]  (!%p419_p0), %s149_s5, 128, %s151_s4, %s137_s6, %s628_s7, %s629_s8, %s630_s15  }
  0x1a   : > { %p402_p1 = scmp.ge.s32.totalorder %s626_s14, 1  ;;  %p158_p2 = scmp.lt.s32.totalorder %s626_s14, 3 }
  0x1c   : > { %p159_p3 = pnand %p402_p1, %p158_p2 }
  0x1d   : > { %s720_s16 = sand.u32 (!%p159_p3), 1, %s610_s10  }
  0x1e   : > { %162 = sbr.rel (%p159_p3) target bundleno = 67 (0x43), region = 24  ;;  %s403_s18 = sshll.u32 (!%p159_p3), %s720_s16, 3 }
  0x1f   : > { %s165_s20 = scalar_lea.sflag (!%p159_p3), [#allocation3], %s720_s16  ;;  %s168_s26 = scalar_lea.vmem (!%p159_p3), [#allocation2], %s403_s18 }
  0x23   : > { %593 = dma.done.wait (%p693_p8), %s165_s20, 128  }
  0x24   : > { %595 = vsyncadd (%p693_p8), %s165_s20, 4294967168  ;;  %vm198_vm0 = vcmask 1043456   ;;  %v196_v0 = vld [vmem:[%s168_s26] sm:$0xf]  ;;  %v197_v1 = vld [vmem:[%s168_s26 + $0x4] sm:$0xf] }
  0x25   : > { %v199_v2 = vsel %vm198_vm0, %v196_v0, -inf  ;;  %v206_v3 = vsel %vm198_vm0, %v197_v1, -inf  ;;  %v213_v4 = vsel %vm198_vm0, %v196_v0, 0.0  ;;  %v220_v5 = vsel %vm198_vm0, %v197_v1, 0.0  ;;  %s404_s19 = sshll.u32 %s720_s16, 1  ;;  %s408_s21 = sshll.u32 %s618_s12, 1 }
  0x26   : > { %v200_v6 = vrot.slane %v199_v2, 4  ;;  %v207_v7 = vrot.slane %v206_v3, 4  ;;  %v214_v8 = vrot.slane %v213_v4, 4  ;;  %v221_v9 = vrot.slane %v220_v5, 4  ;;  %s258_s28 = scalar_lea.hbm %s795_s1, %s408_s21  ;;  %s274_s3 = scalar_lea.hbm %s796_s2, %s408_s21 }
  0x27   : > { %s187_s4 = scalar_lea.vmem [#allocation5], %s404_s19  ;;  %s262_s5 = sshll.u32 %s258_s28, 4  ;;  %vm229_vm1 = vcmask 1041409   ;;  %s263_s5 = int_to_ptr.hbm [resolvable:$true] %s262_s5 }
  0x28   : > { %v201_v10 = vmax.f32 %v199_v2, %v200_v6  ;;  %v208_v11 = vmax.f32 %v206_v3, %v207_v7  ;;  %v215_v12 = vadd.f32 %v214_v8, %v213_v4  ;;  %v222_v13 = vadd.f32 %v221_v9, %v220_v5  ;;  %s260_s12 = sshll.u32 %s187_s4, 4  ;;  %s736_s6 = scalar_lea.vmem [#allocation6], %s404_s19  ;;  %s261_s12 = int_to_ptr.vmem [resolvable:$true] %s260_s12 }
  0x29   : > { %s276_s7 = sshll.u32 %s736_s6, 4  ;;  %s278_s8 = sshll.u32 %s274_s3, 4  ;;  %s740_s7 = int_to_ptr.vmem [resolvable:$true] %s276_s7  ;;  %s742_s8 = int_to_ptr.hbm [resolvable:$true] %s278_s8 }
  0x2a   : > { %v202_v14 = vrot.slane %v201_v10, 2  ;;  %v209_v15 = vrot.slane %v208_v11, 2  ;;  %v216_v16 = vrot.slane %v215_v12, 2  ;;  %v223_v17 = vrot.slane %v222_v13, 2  ;;  %s241_s15 = scalar_lea.sflag [#allocation4], %s720_s16  ;;  %s526_s18 = sshra.s32 %s263_s5, 4  ;;  %s527_s18 = int_to_ptr.hbm [resolvable:$true] %s526_s18 }
  0x2b   : > { %s528_s20 = scalar_lea.hbm %s527_s18, 2  ;;  %s532_s21 = scalar_lea.hbm %s795_s1, 4 }
  0x2c   : > { %v203_v18 = vmax.f32 %v201_v10, %v202_v14  ;;  %v210_v19 = vmax.f32 %v208_v11, %v209_v15  ;;  %v217_v20 = vadd.f32 %v216_v16, %v215_v12  ;;  %v224_v21 = vadd.f32 %v223_v17, %v222_v13  ;;  %p529_p4 = scmp.ne.s32.totalorder %s527_s18, %s528_s20  ;;  %p533_p7 = scmp.lt.s32.totalorder %s527_s18, %s795_s1 }
  0x2d   : > { %p534_p8 = scmp.lt.s32.totalorder %s532_s21, %s528_s20 }
  0x2e   : > { %v204_v22 = vrot.slane %v203_v18, 1  ;;  %v211_v23 = vrot.slane %v210_v19, 1  ;;  %v218_v24 = vrot.slane %v217_v20, 1  ;;  %v225_v25 = vrot.slane %v224_v21, 1  ;;  %p530_p5 = pnand %p529_p4, %p697_p9 }
  0x2f   : > { %p535_p10 = por %p534_p8, %p533_p7 }
  0x30   : > { %v205_v26 = vmax.f32 %v203_v18, %v204_v22  ;;  %v212_v27 = vmax.f32 %v210_v19, %v211_v23  ;;  %v219_v28 = vadd.f32 %v218_v24, %v217_v20  ;;  %v226_v29 = vadd.f32 %v225_v25, %v224_v21  ;;  %p531_p6 = pneg %p530_p5 }
  0x32   : > { %v230_v30 = vsel %vm229_vm1, %v212_v27, %v205_v26  ;;  %v233_v31 = vmul.f32 0.25, %v219_v28  ;;  %v234_v32 = vmul.f32 0.25, %v226_v29  ;;  %p536_p13 = pnand %p535_p10, %p531_p6 }
  0x33   : > { %232 = vst [vmem:[%s187_s4] sm:$0x3] %v230_v30 }
  0x34   : > { %v237_v33 = vsel %vm229_vm1, %v234_v32, %v233_v31 }
  0x35   : > { %539 = shalt.err (!%p536_p13)
}
  0x36   : > { %414 = dma.vmem_to_hbm [thread:$0]  (%p697_p9), %s261_s12, 32, %s263_s5, %s241_s15   ;;  %239 = vst [vmem:[%s736_s6] sm:$0x3] %v237_v33 }
  0x37   : > { %s246_s28 = scalar_lea.sflag [#allocation7], %s720_s16  ;;  %s554_s29 = sshra.s32 %s742_s8, 4  ;;  %s555_s29 = int_to_ptr.hbm [resolvable:$true] %s554_s29 }
  0x38   : > { %s556_s30 = scalar_lea.hbm %s555_s29, 2  ;;  %s560_s18 = scalar_lea.hbm %s796_s2, 4 }
  0x39   : > { %p557_p0 = scmp.ne.s32.totalorder %s555_s29, %s556_s30  ;;  %p561_p3 = scmp.lt.s32.totalorder %s555_s29, %s796_s2 }
  0x3a   : > { %p562_p4 = scmp.lt.s32.totalorder %s560_s18, %s556_s30 }
  0x3b   : > { %p558_p1 = pnand %p557_p0, %p697_p9 }
  0x3c   : > { %p563_p5 = por %p562_p4, %p561_p3 }
  0x3d   : > { %p559_p2 = pneg %p558_p1 }
  0x3f   : > { %p564_p6 = pnand %p563_p5, %p559_p2 }
  0x41   : > { %567 = shalt.err (!%p564_p6)
}
  0x42   : > { %415 = dma.vmem_to_hbm [thread:$0]  (%p697_p9), %s740_s7, 32, %s742_s8, %s246_s28  }
  0x43 PF: > { %s290_s16 = sand.u32 1, %s606_s9   ;;  %p423_p7 = pnand %p399_p12, %p704_p11 }
  0x44   : > { %s291_s12 = scalar_lea.sflag [#allocation4], %s290_s16 }
  0x45   : > { %p424_p8 = pneg %p423_p7 }
  0x47   : > { %597 = dma.done.wait (%p424_p8), %s291_s12, 32  }
  0x48   : > { %599 = vsyncadd (%p424_p8), %s291_s12, 4294967264  ;;  %s301_s5 = scalar_lea.sflag [#allocation7], %s290_s16 }
  0x49   : > { %601 = dma.done.wait (%p424_p8), %s301_s5, 32  }
  0x4a   : > { %603 = vsyncadd (%p424_p8), %s301_s5, 4294967264  ;;  %s22_s14 = sadd.s32 1, %s626_s14   ;;  %s801_s9 = smov %s610_s10 }
  0x4b   : > { %p19_p10 = scmp.ge.s32.totalorder %s22_s14, 4   ;;  %s802_s10 = smov %s614_s11 }
  0x4c   : > { %s803_s11 = smov %s702_s23  ;;  %s804_s12 = smov %s622_s13 }
  0x4d   : > { %s805_s13 = smov %s807_s17  ;;  %21 = sbr.rel (!%p19_p10) target bundleno = 8 (0x8), region = 86 }
  0x52   :  { %307 = vsyncpa [#allocation3], 1 }
  0x53   :  { %309 = vsyncpa [#allocation3 + $0x1], 1 }
  0x54   :  { %310 = vsyncpa [#allocation4], 1 }
  0x55   :  { %312 = vsyncpa [#allocation4 + $0x1], 1 }
  0x56   :  { %313 = vsyncpa [#allocation7], 1 }
  0x57   :  { %315 = vsyncpa [#allocation7 + $0x1], 1 }

</bundles_post_ra>
